<compile_context>
chip_gen: v5e
topology: v5e:2x2
jax: 0.10.0
libtpu: 0.0.40
codegen_flags: <defaults>
</compile_context>

<pallas_src>
import math

import jax
import jax.numpy as jnp
from jax import lax
from jax.experimental import pallas as pl
from jax.experimental.pallas import tpu as pltpu

_LANES = 128
_MAX_TILE_D = 16384          # chunk loop is per-128-lane, so larger tiles are fine
_MAX_ROW_BLOCK = 64          # 2 x (64,128) f32 accumulators = 16 vregs (fits reg file)


def _vmem_budgets():
    """Generation-aware scoped-VMEM limit and double-buffered-input budget."""
    try:
        cap = int(pltpu.get_tpu_info().vmem_capacity_bytes)
    except Exception:
        cap = 64 * 1024 * 1024  # conservative (v7x per-TC) fallback
    vmem_limit = int(0.40 * cap)
    input_budget = int(0.25 * cap)
    return vmem_limit, input_budget


def _make_dice_partial_kernel(tile_d, d_row, needs_mask):
    num_chunks = tile_d // _LANES

    def kernel(x_ref, t_ref, inter_ref, denom_ref):
        k = pl.program_id(1)  # reduction (D) axis

        @pl.when(k == 0)
        def _():
            inter_ref[...] = jnp.zeros_like(inter_ref)
            denom_ref[...] = jnp.zeros_like(denom_ref)

        rows = inter_ref.shape[0]
        inter = jnp.zeros((rows, _LANES), jnp.float32)
        denom = jnp.zeros((rows, _LANES), jnp.float32)

        if needs_mask:
            lane = lax.broadcasted_iota(jnp.int32, (1, _LANES), 1)
            rem = d_row - k * tile_d  # valid columns remaining in this tile

        # Per-chunk load + cast keeps only ~2 vregs of input live; local
        # accumulators stay register-resident for the whole grid step.
        for c in range(num_chunks):
            lo = c * _LANES
            xc = x_ref[:, lo:lo + _LANES].astype(jnp.float32)
            tc = t_ref[:, lo:lo + _LANES].astype(jnp.float32)
            if needs_mask:
                valid = lane < (rem - lo)
                xc = jnp.where(valid, xc, 0.0)   # mask BEFORE multiply (no NaN leak)
                tc = jnp.where(valid, tc, 0.0)
            inter = inter + xc * tc
            denom = denom + (xc + tc)

        # Single resident-accumulator update per grid step.
        inter_ref[...] = inter_ref[...] + inter
        denom_ref[...] = denom_ref[...] + denom

    return kernel


def dice_loss(inp, target, *, tile_d=None):
    """Pallas implementation of DiceLoss.forward(input, target)."""
    n = target.shape[0]
    x = jnp.reshape(inp, (n, -1))        # row-major, identical to torch .view(N, -1)
    t = jnp.reshape(target, (n, -1))
    d = x.shape[1]

    # Sublane repacking: view each sample as `r` consecutive rows so the row
    # dimension is a multiple of 8 (dense sublane usage) when possible.
    r = 1
    if n % 8 != 0:
        cand = 8 // math.gcd(n, 8)
        if cand > 1 and d % cand == 0:
            r = cand
    n_rows = n * r
    d_row = d // r
    if r > 1:
        x = jnp.reshape(x, (n_rows, d_row))
        t = jnp.reshape(t, (n_rows, d_row))

    # Row block: multiple-of-8 divisor of n_rows, capped at 64 so the two
    # (row_block,128) f32 accumulators stay register-resident; ensure >=2 row
    # blocks when n_rows >= 16 so the parallel axis can shard across TCs.
    if n_rows % 8 == 0:
        max_rb = _MAX_ROW_BLOCK
        if n_rows >= 16:
            max_rb = min(max_rb, n_rows // 2)
        row_block = (min(n_rows, max_rb) // 8) * 8
        while n_rows % row_block != 0:
            row_block -= 8
    else:
        row_block = n_rows  # full-extent block (correct, lower sublane util)

    vmem_limit, input_budget = _vmem_budgets()

    # D tile: as wide as the input-buffer budget allows, multiple of 128.
    itemsize = max(jnp.dtype(x.dtype).itemsize, jnp.dtype(t.dtype).itemsize)
    d_ceil = pl.cdiv(d_row, _LANES) * _LANES
    if tile_d is None:
        per_col_bytes = 2 * 2 * row_block * itemsize   # 2 inputs x 2 pipeline buffers
        tile_d = (input_budget // per_col_bytes) // _LANES * _LANES
        tile_d = min(max(tile_d, _LANES), _MAX_TILE_D)
    else:
        tile_d = max(_LANES, (tile_d // _LANES) * _LANES)
    tile_d = min(tile_d, d_ceil)

    num_d_tiles = pl.cdiv(d_row, tile_d)
    needs_mask = (d_row % tile_d) != 0

    kernel = _make_dice_partial_kernel(tile_d, d_row, needs_mask)

    out_shape = (
        jax.ShapeDtypeStruct((n_rows, _LANES), jnp.float32),  # sum(x*t)   partials
        jax.ShapeDtypeStruct((n_rows, _LANES), jnp.float32),  # sum(x + t) partials
    )
    out_spec = pl.BlockSpec((row_block, _LANES), lambda i, k: (i, 0))

    cost = pl.CostEstimate(
        flops=int(3 * n_rows * d_row),
        transcendentals=0,
        bytes_accessed=int(2 * n_rows * d_row * itemsize + 2 * n_rows * _LANES * 4),
    )

    inter_p, denom_p = pl.pallas_call(
        kernel,
        out_shape=out_shape,
        grid_spec=pltpu.PrefetchScalarGridSpec(
            num_scalar_prefetch=0,
            grid=(n_rows // row_block, num_d_tiles),
            in_specs=[
                pl.BlockSpec((row_block, tile_d), lambda i, k: (i, k)),
                pl.BlockSpec((row_block, tile_d), lambda i, k: (i, k)),
            ],
            out_specs=[out_spec, out_spec],
        ),
        compiler_params=pltpu.CompilerParams(
            dimension_semantics=("parallel", "arbitrary"),
            vmem_limit_bytes=int(vmem_limit),
        ),
        cost_estimate=cost,
    )(x, t)

    # Finalize in plain JAX on the tiny (n, r*128) partial-sum arrays.
    inter = jnp.sum(inter_p.reshape(n, -1), axis=1)
    denom = jnp.sum(denom_p.reshape(n, -1), axis=1)

    smooth = jnp.float32(1.0)
    dice = 2.0 * (inter + smooth) / (denom + smooth)
    return jnp.float32(1.0) - jnp.sum(dice) / jnp.float32(n)


def _dice_loss_ref(inp, target):
    n = target.shape[0]
    smooth = 1.0
    x = jnp.reshape(inp, (n, -1)).astype(jnp.float32)
    t = jnp.reshape(target, (n, -1)).astype(jnp.float32)
    inter = jnp.sum(x * t, axis=1)
    loss = 2.0 * (inter + smooth) / (jnp.sum(x, axis=1) + jnp.sum(t, axis=1) + smooth)
    return 1.0 - jnp.sum(loss) / n


if __name__ == "__main__":
    key = jax.random.PRNGKey(0)
    k1, k2 = jax.random.split(key)

    # small NCHW shapes: batch=2, channels=4, spatial=16x16
    x = jax.nn.sigmoid(jax.random.normal(k1, (2, 4, 16, 16), dtype=jnp.float32))
    tgt = (jax.random.uniform(k2, (2, 4, 16, 16)) > 0.5).astype(jnp.float32)

    loss = dice_loss(x, tgt)
    jax.block_until_ready(loss)

    ref = _dice_loss_ref(x, tgt)
    assert jnp.allclose(loss, ref, atol=1e-5, rtol=1e-5), (loss, ref)

    print("KERNEL_OK")
</pallas_src>

<mosaic_0001>
module attributes {stable_mosaic.version = 11 : i64} {
  func.func @kernel(%arg0: i32, %arg1: i32, %arg2: memref<8x256xf32, #tpu.memory_space<vmem>>, %arg3: memref<8x256xf32, #tpu.memory_space<vmem>>, %arg4: memref<8x128xf32, #tpu.memory_space<vmem>>, %arg5: memref<8x128xf32, #tpu.memory_space<vmem>>) attributes {dimension_semantics = [#tpu.dimension_semantics<parallel>, #tpu.dimension_semantics<arbitrary>], iteration_bounds = array<i64: 1, 1>, scalar_prefetch = 0 : i64, scratch_operands = 0 : i64, tpu.core_type = #tpu.core_type<tc>, window_params = [{transform_indices = @transform_0, window_bounds = array<i64: 8, 256>}, {transform_indices = @transform_1, window_bounds = array<i64: 8, 256>}, {transform_indices = @transform_2, window_bounds = array<i64: 8, 128>}, {transform_indices = @transform_3, window_bounds = array<i64: 8, 128>}]} {
    %c0_i32 = arith.constant 0 : i32
    %0 = arith.cmpi eq, %arg1, %c0_i32 : i32
    %1 = arith.extui %0 : i1 to i32
    %c0_i32_0 = arith.constant 0 : i32
    %2 = arith.cmpi ne, %1, %c0_i32_0 : i32
    scf.if %2 {
      %cst_16 = arith.constant 0.000000e+00 : f32
      %23 = vector.broadcast %cst_16 : f32 to vector<8x128xf32>
      %c0_17 = arith.constant 0 : index
      %c0_18 = arith.constant 0 : index
      %24 = vector.load %arg4[%c0_17, %c0_18] : memref<8x128xf32, #tpu.memory_space<vmem>>, vector<8x128xf32>
      tpu.vector_store %arg4[%c0_17, %c0_18], %23 {strides = array<i32>} : memref<8x128xf32, #tpu.memory_space<vmem>>, vector<8x128xf32>,
      %cst_19 = arith.constant 0.000000e+00 : f32
      %25 = vector.broadcast %cst_19 : f32 to vector<8x128xf32>
      %c0_20 = arith.constant 0 : index
      %c0_21 = arith.constant 0 : index
      %26 = vector.load %arg5[%c0_20, %c0_21] : memref<8x128xf32, #tpu.memory_space<vmem>>, vector<8x128xf32>
      tpu.vector_store %arg5[%c0_20, %c0_21], %25 {strides = array<i32>} : memref<8x128xf32, #tpu.memory_space<vmem>>, vector<8x128xf32>,
    } else {
    }
    %cst = arith.constant 0.000000e+00 : f32
    %3 = vector.broadcast %cst : f32 to vector<8x128xf32>
    %cst_1 = arith.constant 0.000000e+00 : f32
    %4 = vector.broadcast %cst_1 : f32 to vector<8x128xf32>
    %c0 = arith.constant 0 : index
    %c0_2 = arith.constant 0 : index
    %5 = vector.load %arg2[%c0, %c0_2] : memref<8x256xf32, #tpu.memory_space<vmem>>, vector<8x128xf32>
    %c0_3 = arith.constant 0 : index
    %c0_4 = arith.constant 0 : index
    %6 = vector.load %arg3[%c0_3, %c0_4] : memref<8x256xf32, #tpu.memory_space<vmem>>, vector<8x128xf32>
    %7 = arith.mulf %5, %6 : vector<8x128xf32>
    %8 = arith.addf %3, %7 : vector<8x128xf32>
    %9 = arith.addf %5, %6 : vector<8x128xf32>
    %10 = arith.addf %4, %9 : vector<8x128xf32>
    %c0_5 = arith.constant 0 : index
    %c128 = arith.constant 128 : index
    %11 = vector.load %arg2[%c0_5, %c128] : memref<8x256xf32, #tpu.memory_space<vmem>>, vector<8x128xf32>
    %c0_6 = arith.constant 0 : index
    %c128_7 = arith.constant 128 : index
    %12 = vector.load %arg3[%c0_6, %c128_7] : memref<8x256xf32, #tpu.memory_space<vmem>>, vector<8x128xf32>
    %13 = arith.mulf %11, %12 : vector<8x128xf32>
    %14 = arith.addf %8, %13 : vector<8x128xf32>
    %15 = arith.addf %11, %12 : vector<8x128xf32>
    %16 = arith.addf %10, %15 : vector<8x128xf32>
    %c0_8 = arith.constant 0 : index
    %c0_9 = arith.constant 0 : index
    %17 = vector.load %arg4[%c0_8, %c0_9] : memref<8x128xf32, #tpu.memory_space<vmem>>, vector<8x128xf32>
    %18 = arith.addf %17, %14 : vector<8x128xf32>
    %c0_10 = arith.constant 0 : index
    %c0_11 = arith.constant 0 : index
    %19 = vector.load %arg4[%c0_10, %c0_11] : memref<8x128xf32, #tpu.memory_space<vmem>>, vector<8x128xf32>
    tpu.vector_store %arg4[%c0_10, %c0_11], %18 {strides = array<i32>} : memref<8x128xf32, #tpu.memory_space<vmem>>, vector<8x128xf32>,
    %c0_12 = arith.constant 0 : index
    %c0_13 = arith.constant 0 : index
    %20 = vector.load %arg5[%c0_12, %c0_13] : memref<8x128xf32, #tpu.memory_space<vmem>>, vector<8x128xf32>
    %21 = arith.addf %20, %16 : vector<8x128xf32>
    %c0_14 = arith.constant 0 : index
    %c0_15 = arith.constant 0 : index
    %22 = vector.load %arg5[%c0_14, %c0_15] : memref<8x128xf32, #tpu.memory_space<vmem>>, vector<8x128xf32>
    tpu.vector_store %arg5[%c0_14, %c0_15], %21 {strides = array<i32>} : memref<8x128xf32, #tpu.memory_space<vmem>>, vector<8x128xf32>,
    return
  }
  func.func @transform_0(%arg0: i32, %arg1: i32) -> (i32, i32) {
    %c0_i32 = arith.constant 0 : i32
    return %arg0, %arg1 : i32, i32
  }
  func.func @transform_1(%arg0: i32, %arg1: i32) -> (i32, i32) {
    %c0_i32 = arith.constant 0 : i32
    return %arg0, %arg1 : i32, i32
  }
  func.func @transform_2(%arg0: i32, %arg1: i32) -> (i32, i32) {
    %c0_i32 = arith.constant 0 : i32
    %c0_i32_0 = arith.constant 0 : i32
    return %arg0, %c0_i32 : i32, i32
  }
  func.func @transform_3(%arg0: i32, %arg1: i32) -> (i32, i32) {
    %c0_i32 = arith.constant 0 : i32
    %c0_i32_0 = arith.constant 0 : i32
    return %arg0, %c0_i32 : i32, i32
  }
}

</mosaic_0001>

<bundles_post_ra>
// kernel: tpu_custom_call.1
= control target key start
LH: loop header
LB: loop body
LE: loop exit
PB: predicated region body
PF: predicated region fallthrough
CT: control target
= control target key end

     0   :  { %9 = vsyncpa [#allocation3], 0  ;;  %s246_s0 = inlined_call_operand.hbm [shape: f32[8,256], index: 0, kind: input, shape index: {}]   ;;  %s247_s1 = inlined_call_operand.hbm [shape: f32[8,256], index: 1, kind: input, shape index: {}]   ;;  %s248_s2 = inlined_call_operand.hbm [shape: f32[8,128], index: 2, kind: output, shape index: {0}]   ;;  %s249_s3 = inlined_call_operand.hbm [shape: f32[8,128], index: 3, kind: output, shape index: {1}]  }
   0x1   :  { %10 = vsyncpa [#allocation6], 0 }
   0x2   :  { %11 = vsyncpa [#allocation4], 0 }
   0x3   :  { %12 = vsyncpa [#allocation9], 0  ;;  %s18_s14 = sshll.u32 %s246_s0, 4  ;;  %s210_s15 = smov [#allocation2]   ;;  %s19_s14 = int_to_ptr.hbm [resolvable:$true] %s18_s14 }
   0x4   :  { %s20_s16 = sshll.u32 %s210_s15, 4  ;;  %s29_s19 = sshll.u32 %s247_s1, 4  ;;  %s21_s16 = int_to_ptr.vmem [resolvable:$true] %s20_s16  ;;  %s30_s19 = int_to_ptr.hbm [resolvable:$true] %s29_s19 }
   0x5   :  { %23 = dma.hbm_to_vmem [thread:$0]  %s19_s14, 256, %s21_s16, [#allocation3]  }
   0x6   :  { %s211_s20 = smov [#allocation5]  }
   0x7   :  { %s31_s21 = sshll.u32 %s211_s20, 4  ;;  %s32_s21 = int_to_ptr.vmem [resolvable:$true] %s31_s21 }
   0x8   :  { %34 = dma.hbm_to_vmem [thread:$0]  %s30_s19, 256, %s32_s21, [#allocation6]  }
   0x9   :  { %202 = dma.done.wait [#allocation3], 256  }
   0xa   :  { %203 = vsyncadd [#allocation3], 4294967040 }
   0xb   :  { %204 = dma.done.wait [#allocation6], 256  }
   0xc   :  { %205 = vsyncadd [#allocation6], 4294967040  ;;  %v49_v0 = vld [vmem:[#allocation2] sm:$0xff]  ;;  %v50_v1 = vld [vmem:[#allocation5] sm:$0xff]  ;;  %s212_s0 = smov [#allocation7]   ;;  %s74_s24 = sshll.u32 %s248_s2, 4  ;;  %s75_s24 = int_to_ptr.hbm [resolvable:$true] %s74_s24 }
   0xd   :  { %v55_v2 = vld [vmem:[#allocation2 + $0x8] sm:$0xff]  ;;  %v51_v3 = vmul.f32 %v50_v1, %v49_v0  ;;  %v56_v4 = vld [vmem:[#allocation5 + $0x8] sm:$0xff]  ;;  %v53_v5 = vadd.f32 %v50_v1, %v49_v0  ;;  %s72_s1 = sshll.u32 %s212_s0, 4  ;;  %s213_s25 = smov [#allocation8]   ;;  %s73_s1 = int_to_ptr.vmem [resolvable:$true] %s72_s1 }
   0xe   :  { %v57_v6 = vmul.f32 %v56_v4, %v55_v2  ;;  %v59_v7 = vadd.f32 %v56_v4, %v55_v2  ;;  %s83_s26 = sshll.u32 %s213_s25, 4  ;;  %s85_s29 = sshll.u32 %s249_s3, 4  ;;  %s84_s26 = int_to_ptr.vmem [resolvable:$true] %s83_s26  ;;  %s86_s29 = int_to_ptr.hbm [resolvable:$true] %s85_s29 }
  0x10   :  { %v58_v8 = vadd.f32 %v57_v6, %v51_v3  ;;  %v60_v9 = vadd.f32 %v59_v7, %v53_v5 }
  0x12   :  { %63 = vst [vmem:[#allocation7] sm:$0xff] %v58_v8 }
  0x13   :  { %66 = vst [vmem:[#allocation8] sm:$0xff] %v60_v9  ;;  %77 = dma.vmem_to_hbm [thread:$0]  %s73_s1, 128, %s75_s24, [#allocation4]  }
  0x14   :  { %88 = dma.vmem_to_hbm [thread:$0]  %s84_s26, 128, %s86_s29, [#allocation9]  }
  0x15   :  { %206 = dma.done.wait [#allocation4], 128  }
  0x16   :  { %207 = vsyncadd [#allocation4], 4294967168 }
  0x17   :  { %208 = dma.done.wait [#allocation9], 128  }
  0x18   :  { %209 = vsyncadd [#allocation9], 4294967168 }
  0x19   :  { %97 = vsyncpa [#allocation3], 1 }
  0x1a   :  { %98 = vsyncpa [#allocation6], 1 }
  0x1b   :  { %99 = vsyncpa [#allocation4], 1 }
  0x1c   :  { %100 = vsyncpa [#allocation9], 1 }

</bundles_post_ra>
